<compile_context>
chip_gen: v7x
topology: tpu7x:2x2x1
jax: 0.10.0
libtpu: 0.0.40
codegen_flags: <defaults>
</compile_context>

<pallas_src>
import jax
import jax.numpy as jnp
from jax.experimental import pallas as pl
from jax.experimental.pallas import tpu as pltpu


def _round_up(n: int, m: int) -> int:
    return (n + m - 1) // m * m


def actor_sac_kernel(x_ref,
                     w1_ref, b1_ref,
                     w2_ref, b2_ref,
                     wh_ref, bh_ref,
                     out_ref):
    # x tile: (tb, state_dim). All layers computed feature-major:
    # features on sublanes, batch on lanes -> lane-dense tiles throughout.
    x = x_ref[...].astype(w1_ref.dtype)

    # h = ReLU(W1 @ x^T + b1) : (h1, tb). Transpose folded into the
    # contraction (contract dim 1 of both operands, i.e. the q @ k^T pattern).
    h = jax.lax.dot_general(w1_ref[...], x, (((1,), (1,)), ((), ())),
                            preferred_element_type=jnp.float32)
    h = jnp.maximum(h + b1_ref[...], 0.0)

    # h = ReLU(W2 @ h + b2) : (h2, tb)
    h = jnp.dot(w2_ref[...], h.astype(w2_ref.dtype),
                preferred_element_type=jnp.float32)
    h = jnp.maximum(h + b2_ref[...], 0.0)

    # Fused heads: (2A, tb); rows [0, A) = mu, rows [A, 2A) = log_std.
    heads = jnp.dot(wh_ref[...], h.astype(wh_ref.dtype),
                    preferred_element_type=jnp.float32) + bh_ref[...]

    a = heads.shape[0] // 2
    row = jax.lax.broadcasted_iota(jnp.int32, heads.shape, dimension=0)
    # Full-width clip/exp (EUP slot has slack); per-sublane-row select so the
    # whole (2A, tb) tile is written with one dense store.
    std_branch = jnp.exp(jnp.clip(heads, -20.0, 2.0))
    out_ref[...] = jnp.where(row < a, heads, std_branch).astype(out_ref.dtype)


def _choose_batch_tile(B: int, block_batch: int) -> int:
    if B <= 128:
        return B  # single full-batch block (equal-to-full-dim exception)
    # Lane-aligned tile (multiple of 128); keep >= 2 grid steps so v7x's two
    # TensorCores both get work via the "parallel" batch axis.
    half = _round_up(-(-B // 2), 128)
    return max(128, min(_round_up(block_batch, 128), half))


def actor_sac_forward(x, params, *, block_batch=1024, out_dtype=jnp.bfloat16):
    """Runs the ActorNet_SAC forward pass; returns (mu, std), each (B, A)."""
    B, state_dim = x.shape
    h1 = params["w1"].shape[0]
    h2 = params["w2"].shape[0]
    two_a = params["wh"].shape[0]
    action_dim = two_a // 2

    tb = _choose_batch_tile(B, block_batch)
    grid = (pl.cdiv(B, tb),)  # ragged tail blocks are masked by Pallas

    in_specs = [
        pl.BlockSpec((tb, state_dim), lambda i: (i, 0)),       # x: batch-tiled
        pl.BlockSpec(params["w1"].shape, lambda i: (0, 0)),    # weights/biases:
        pl.BlockSpec(params["b1"].shape, lambda i: (0, 0)),    # constant maps ->
        pl.BlockSpec(params["w2"].shape, lambda i: (0, 0)),    # VMEM-resident
        pl.BlockSpec(params["b2"].shape, lambda i: (0, 0)),    # across steps
        pl.BlockSpec(params["wh"].shape, lambda i: (0, 0)),
        pl.BlockSpec(params["bh"].shape, lambda i: (0, 0)),
    ]
    out_specs = pl.BlockSpec((two_a, tb), lambda i: (0, i))

    param_bytes = sum(int(v.size) * v.dtype.itemsize for v in params.values())
    cost = pl.CostEstimate(
        flops=2 * B * (state_dim * h1 + h1 * h2 + h2 * two_a),
        transcendentals=B * two_a,
        bytes_accessed=int(x.size) * x.dtype.itemsize
        + B * two_a * jnp.dtype(out_dtype).itemsize
        + param_bytes,
    )

    out = pl.pallas_call(
        actor_sac_kernel,
        out_shape=jax.ShapeDtypeStruct((two_a, B), out_dtype),
        grid=grid,
        in_specs=in_specs,
        out_specs=out_specs,
        compiler_params=pltpu.CompilerParams(
            dimension_semantics=("parallel",)),  # v7x: shard batch over 2 TCs
        cost_estimate=cost,
    )(x,
      params["w1"], params["b1"],
      params["w2"], params["b2"],
      params["wh"], params["bh"])

    # (2A, B) lane-dense slab -> (B, A) mu / std; tiny transpose done by XLA.
    mu = out[:action_dim, :].T
    std = out[action_dim:, :].T
    return mu, std


def init_params(key, state_dim, hidden_sizes, action_dim,
                param_dtype=jnp.bfloat16):
    """Deterministic synthetic init, torch-layout (out_dim, in_dim) weights."""
    h1, h2 = hidden_sizes
    ks = jax.random.split(key, 6)

    def lin_w(k, fan_in, fan_out):
        bound = 1.0 / jnp.sqrt(jnp.float32(fan_in))
        return jax.random.uniform(k, (fan_out, fan_in), jnp.float32,
                                  -bound, bound)

    w1 = lin_w(ks[0], state_dim, h1)
    w2 = lin_w(ks[1], h1, h2)
    wmu = lin_w(ks[2], h2, action_dim)
    wls = lin_w(ks[3], h2, action_dim)
    # Hidden biases: constant 0 (matches the `initialize is not None` branch).
    b1 = jnp.zeros((h1, 1), jnp.float32)
    b2 = jnp.zeros((h2, 1), jnp.float32)
    # Head biases: small uniform (torch default-ish), column-vector layout.
    bb = 1.0 / jnp.sqrt(jnp.float32(h2))
    bmu = jax.random.uniform(ks[4], (action_dim, 1), jnp.float32, -bb, bb)
    bls = jax.random.uniform(ks[5], (action_dim, 1), jnp.float32, -bb, bb)

    # Fuse the two heads into a single (2A, h2) weight / (2A, 1) bias.
    wh = jnp.concatenate([wmu, wls], axis=0)
    bh = jnp.concatenate([bmu, bls], axis=0)

    return dict(
        w1=w1.astype(param_dtype), b1=b1,
        w2=w2.astype(param_dtype), b2=b2,
        wh=wh.astype(param_dtype), bh=bh,
    )


def reference_forward(x, p):
    """Pure-JAX reference mirroring the kernel's bf16-operand / f32-accum math."""
    def lin(a, w, b):
        return jnp.dot(a.astype(jnp.bfloat16).astype(jnp.float32),
                       w.astype(jnp.float32).T) + b[:, 0]

    h = jnp.maximum(lin(x, p["w1"], p["b1"]), 0.0)
    h = jnp.maximum(lin(h, p["w2"], p["b2"]), 0.0)
    heads = lin(h, p["wh"], p["bh"])
    a = p["wh"].shape[0] // 2
    mu = heads[:, :a]
    std = jnp.exp(jnp.clip(heads[:, a:], -20.0, 2.0))
    return mu, std


def _check(mu, std, mu_ref, std_ref, atol=2e-2, rtol=2e-2):
    mu = mu.astype(jnp.float32)
    std = std.astype(jnp.float32)
    assert jnp.allclose(mu, mu_ref, atol=atol, rtol=rtol), "mu mismatch"
    assert jnp.allclose(std, std_ref, atol=atol, rtol=rtol), "std mismatch"


if __name__ == "__main__":
    state_dim = 16
    hidden_sizes = (32, 32)
    action_dim = 8

    key = jax.random.PRNGKey(0)
    kx, kp, kx2, kx3 = jax.random.split(key, 4)
    params = init_params(kp, state_dim, hidden_sizes, action_dim)

    # Small batch (grid of 1, full-batch block).
    x = jax.random.normal(kx, (8, state_dim), jnp.float32)
    mu, std = actor_sac_forward(x, params)
    jax.block_until_ready((mu, std))
    _check(mu, std, *reference_forward(x, params))
    assert mu.shape == (8, action_dim) and std.shape == (8, action_dim)

    # Larger ragged batch: >=2 grid steps, 128-lane tiles, masked tail block.
    x2 = jax.random.normal(kx2, (300, state_dim), jnp.float32)
    mu2, std2 = actor_sac_forward(x2, params)
    jax.block_until_ready((mu2, std2))
    _check(mu2, std2, *reference_forward(x2, params))
    assert mu2.shape == (300, action_dim) and std2.shape == (300, action_dim)

    # Tiny non-multiple-of-8 batch (equal-to-full-dim block path, no padding).
    x3 = jax.random.normal(kx3, (5, state_dim), jnp.float32)
    mu3, std3 = actor_sac_forward(x3, params)
    jax.block_until_ready((mu3, std3))
    _check(mu3, std3, *reference_forward(x3, params))
    assert mu3.shape == (5, action_dim) and std3.shape == (5, action_dim)

    # TODO(synk): ActivatedDiagGaussianDistribution helpers (rsample,
    # tanh-corrected log_prob, entropy, kl) are stochastic / host-side ops and
    # are not part of forward(); they are intentionally left out of the kernel.

    print("KERNEL_OK")
</pallas_src>

<mosaic_0001>
module attributes {stable_mosaic.version = 11 : i64} {
  func.func @actor_sac_kernel(%arg0: i32, %arg1: memref<8x16xf32, #tpu.memory_space<vmem>>, %arg2: memref<32x16xbf16, #tpu.memory_space<vmem>>, %arg3: memref<32x1xf32, #tpu.memory_space<vmem>>, %arg4: memref<32x32xbf16, #tpu.memory_space<vmem>>, %arg5: memref<32x1xf32, #tpu.memory_space<vmem>>, %arg6: memref<16x32xbf16, #tpu.memory_space<vmem>>, %arg7: memref<16x1xf32, #tpu.memory_space<vmem>>, %arg8: memref<16x8xbf16, #tpu.memory_space<vmem>>) attributes {dimension_semantics = [#tpu.dimension_semantics<parallel>], iteration_bounds = array<i64: 1>, scalar_prefetch = 0 : i64, scratch_operands = 0 : i64, tpu.core_type = #tpu.core_type<tc>, window_params = [{transform_indices = @transform_0, window_bounds = array<i64: 8, 16>}, {pipeline_mode = #tpu.pipeline_mode<synchronous>, transform_indices = @transform_1, window_bounds = array<i64: 32, 16>}, {pipeline_mode = #tpu.pipeline_mode<synchronous>, transform_indices = @transform_2, window_bounds = array<i64: 32, 1>}, {pipeline_mode = #tpu.pipeline_mode<synchronous>, transform_indices = @transform_3, window_bounds = array<i64: 32, 32>}, {pipeline_mode = #tpu.pipeline_mode<synchronous>, transform_indices = @transform_4, window_bounds = array<i64: 32, 1>}, {pipeline_mode = #tpu.pipeline_mode<synchronous>, transform_indices = @transform_5, window_bounds = array<i64: 16, 32>}, {pipeline_mode = #tpu.pipeline_mode<synchronous>, transform_indices = @transform_6, window_bounds = array<i64: 16, 1>}, {transform_indices = @transform_7, window_bounds = array<i64: 16, 8>}]} {
    %c0 = arith.constant 0 : index
    %c0_0 = arith.constant 0 : index
    %0 = vector.load %arg1[%c0, %c0_0] : memref<8x16xf32, #tpu.memory_space<vmem>>, vector<8x16xf32>
    %1 = arith.truncf %0 : vector<8x16xf32> to vector<8x16xbf16>
    %c0_1 = arith.constant 0 : index
    %c0_2 = arith.constant 0 : index
    %2 = vector.load %arg2[%c0_1, %c0_2] : memref<32x16xbf16, #tpu.memory_space<vmem>>, vector<32x16xbf16>
    %cst = arith.constant dense<0.000000e+00> : vector<32x8xf32>
    %3 = tpu.matmul %2, %1, %cst {dimension_numbers = #tpu.dot_dimension_numbers<[1], [1], [0], [0], [0, 0, 1, 0], [], []>} : vector<32x16xbf16>, vector<8x16xbf16>, vector<32x8xf32> -> vector<32x8xf32>
    %c0_3 = arith.constant 0 : index
    %c0_4 = arith.constant 0 : index
    %4 = vector.load %arg3[%c0_3, %c0_4] : memref<32x1xf32, #tpu.memory_space<vmem>>, vector<32x1xf32>
    %5 = vector.broadcast %4 : vector<32x1xf32> to vector<32x8xf32>
    %6 = arith.addf %3, %5 : vector<32x8xf32>
    %cst_5 = arith.constant 0.000000e+00 : f32
    %7 = vector.broadcast %cst_5 : f32 to vector<32x8xf32>
    %8 = arith.maximumf %6, %7 : vector<32x8xf32>
    %c0_6 = arith.constant 0 : index
    %c0_7 = arith.constant 0 : index
    %9 = vector.load %arg4[%c0_6, %c0_7] : memref<32x32xbf16, #tpu.memory_space<vmem>>, vector<32x32xbf16>
    %10 = arith.truncf %8 : vector<32x8xf32> to vector<32x8xbf16>
    %cst_8 = arith.constant dense<0.000000e+00> : vector<32x8xf32>
    %11 = tpu.matmul %9, %10, %cst_8 {dimension_numbers = #tpu.dot_dimension_numbers<[1], [0], [0], [1], [0, 0, 1, 1], [], []>} : vector<32x32xbf16>, vector<32x8xbf16>, vector<32x8xf32> -> vector<32x8xf32>
    %c0_9 = arith.constant 0 : index
    %c0_10 = arith.constant 0 : index
    %12 = vector.load %arg5[%c0_9, %c0_10] : memref<32x1xf32, #tpu.memory_space<vmem>>, vector<32x1xf32>
    %13 = vector.broadcast %12 : vector<32x1xf32> to vector<32x8xf32>
    %14 = arith.addf %11, %13 : vector<32x8xf32>
    %cst_11 = arith.constant 0.000000e+00 : f32
    %15 = vector.broadcast %cst_11 : f32 to vector<32x8xf32>
    %16 = arith.maximumf %14, %15 : vector<32x8xf32>
    %c0_12 = arith.constant 0 : index
    %c0_13 = arith.constant 0 : index
    %17 = vector.load %arg6[%c0_12, %c0_13] : memref<16x32xbf16, #tpu.memory_space<vmem>>, vector<16x32xbf16>
    %18 = arith.truncf %16 : vector<32x8xf32> to vector<32x8xbf16>
    %cst_14 = arith.constant dense<0.000000e+00> : vector<16x8xf32>
    %19 = tpu.matmul %17, %18, %cst_14 {dimension_numbers = #tpu.dot_dimension_numbers<[1], [0], [0], [1], [0, 0, 1, 1], [], []>} : vector<16x32xbf16>, vector<32x8xbf16>, vector<16x8xf32> -> vector<16x8xf32>
    %c0_15 = arith.constant 0 : index
    %c0_16 = arith.constant 0 : index
    %20 = vector.load %arg7[%c0_15, %c0_16] : memref<16x1xf32, #tpu.memory_space<vmem>>, vector<16x1xf32>
    %21 = vector.broadcast %20 : vector<16x1xf32> to vector<16x8xf32>
    %22 = arith.addf %19, %21 : vector<16x8xf32>
    %23 = tpu.iota {dimensions = array<i32: 0>} : vector<16x8xi32>
    %cst_17 = arith.constant -2.000000e+01 : f32
    %cst_18 = arith.constant 2.000000e+00 : f32
    %24 = vector.broadcast %cst_17 : f32 to vector<16x8xf32>
    %25 = arith.maximumf %24, %22 : vector<16x8xf32>
    %26 = vector.broadcast %cst_18 : f32 to vector<16x8xf32>
    %27 = arith.minimumf %26, %25 : vector<16x8xf32>
    %28 = math.exp %27 : vector<16x8xf32>
    %c8_i32 = arith.constant 8 : i32
    %29 = vector.broadcast %c8_i32 : i32 to vector<16x8xi32>
    %30 = arith.cmpi slt, %23, %29 : vector<16x8xi32>
    %31 = arith.select %30, %22, %28 : vector<16x8xi1>, vector<16x8xf32>
    %32 = arith.truncf %31 : vector<16x8xf32> to vector<16x8xbf16>
    %c0_19 = arith.constant 0 : index
    %c0_20 = arith.constant 0 : index
    %33 = vector.load %arg8[%c0_19, %c0_20] : memref<16x8xbf16, #tpu.memory_space<vmem>>, vector<16x8xbf16>
    tpu.vector_store %arg8[%c0_19, %c0_20], %32 {strides = array<i32>} : memref<16x8xbf16, #tpu.memory_space<vmem>>, vector<16x8xbf16>,
    return
  }
  func.func @transform_0(%arg0: i32) -> (i32, i32) {
    %c0_i32 = arith.constant 0 : i32
    %c0_i32_0 = arith.constant 0 : i32
    return %arg0, %c0_i32 : i32, i32
  }
  func.func @transform_1(%arg0: i32) -> (i32, i32) {
    %c0_i32 = arith.constant 0 : i32
    %c0_i32_0 = arith.constant 0 : i32
    %c0_i32_1 = arith.constant 0 : i32
    return %c0_i32, %c0_i32_0 : i32, i32
  }
  func.func @transform_2(%arg0: i32) -> (i32, i32) {
    %c0_i32 = arith.constant 0 : i32
    %c0_i32_0 = arith.constant 0 : i32
    %c0_i32_1 = arith.constant 0 : i32
    return %c0_i32, %c0_i32_0 : i32, i32
  }
  func.func @transform_3(%arg0: i32) -> (i32, i32) {
    %c0_i32 = arith.constant 0 : i32
    %c0_i32_0 = arith.constant 0 : i32
    %c0_i32_1 = arith.constant 0 : i32
    return %c0_i32, %c0_i32_0 : i32, i32
  }
  func.func @transform_4(%arg0: i32) -> (i32, i32) {
    %c0_i32 = arith.constant 0 : i32
    %c0_i32_0 = arith.constant 0 : i32
    %c0_i32_1 = arith.constant 0 : i32
    return %c0_i32, %c0_i32_0 : i32, i32
  }
  func.func @transform_5(%arg0: i32) -> (i32, i32) {
    %c0_i32 = arith.constant 0 : i32
    %c0_i32_0 = arith.constant 0 : i32
    %c0_i32_1 = arith.constant 0 : i32
    return %c0_i32, %c0_i32_0 : i32, i32
  }
  func.func @transform_6(%arg0: i32) -> (i32, i32) {
    %c0_i32 = arith.constant 0 : i32
    %c0_i32_0 = arith.constant 0 : i32
    %c0_i32_1 = arith.constant 0 : i32
    return %c0_i32, %c0_i32_0 : i32, i32
  }
  func.func @transform_7(%arg0: i32) -> (i32, i32) {
    %c0_i32 = arith.constant 0 : i32
    %c0_i32_0 = arith.constant 0 : i32
    return %c0_i32, %arg0 : i32, i32
  }
}

</mosaic_0001>

<bundles_post_ra>
// kernel: tpu_custom_call.1
= control target key start
LH: loop header
LB: loop body
LE: loop exit
PB: predicated region body
PF: predicated region fallthrough
CT: control target
= control target key end

     0   :  { %vm67_vm0 = vcmask 130048   ;;  %v384_v1 = vmov 0   ;;  %vm170_vm1 = vcmask 261120   ;;  %v385_v36 = vmov 0.0   ;;  %s488_s0 = inlined_call_operand.vmem [shape: f32[8,16], index: 0, kind: input, shape index: {}]   ;;  %s489_s1 = inlined_call_operand.vmem [shape: bf16[32,16], index: 1, kind: input, shape index: {}]   ;;  %s490_s2 = inlined_call_operand.vmem [shape: f32[32,1], index: 2, kind: input, shape index: {}]   ;;  %s491_s4 = inlined_call_operand.vmem [shape: f32[32,1], index: 4, kind: input, shape index: {}]   ;;  %s492_s6 = inlined_call_operand.vmem [shape: f32[16,1], index: 6, kind: input, shape index: {}]   ;;  %s493_s3 = inlined_call_operand.vmem [shape: bf16[32,32], index: 3, kind: input, shape index: {}]   ;;  %s494_s5 = inlined_call_operand.vmem [shape: bf16[16,32], index: 5, kind: input, shape index: {}]   ;;  %s495_s7 = inlined_call_operand.vmem [shape: bf16[16,8], index: 7, kind: output, shape index: {}]  }
   0x1   :  { %v27_v0 = vld [vmem:[%s488_s0] sm:$0xff]  ;;  %375 = vset.pattern.permute.xlu0 %v384_v1  ;;  %376 = vset.pattern.permute.xlu1 %v384_v1  ;;  %v35_v5 = vld [vmem:[%s490_s2 + $0x10] sm:$0xff]  ;;  %v34_v7 = vld [vmem:[%s490_s2 + $0x8] sm:$0xff]  ;;  %vm386_vm2 = vmmov 0   ;;  %vm318_vm3 = vcmask 60416  }
   0x2   :  { %v28_v2 = vpack.c.bf16 %v27_v0, %v27_v0  ;;  %v377_v3 = vld [vmem:[%s489_s1] sm:$0xff]   ;;  %49 = vperm.xlu1 %376, %v35_v5   ;;  %v36_v8 = vld [vmem:[%s490_s2 + $0x18] sm:$0xff]  ;;  %v378_v9 = vld [vmem:[%s489_s1 + $0x8] sm:$0xff]  }
   0x3   :  { %v33_v4 = vld [vmem:[%s490_s2] sm:$0xff]  ;;  %351 = vmatprep.mubr.msk.bf16.mxu0 %vm67_vm0, %v377_v3  ;;  %v137_v11 = vld [vmem:[%s491_s4 + $0x8] sm:$0xff]  ;;  %v138_v12 = vld [vmem:[%s491_s4 + $0x10] sm:$0xff] }
   0x4   :  { %371 = vmatprep.subr.msk.bf16.mxu0 %vm67_vm0, %v28_v2  ;;  %v75_v6 = vsel %vm67_vm0, %v28_v2, 0  ;;  %39 = vperm.xlu0 %375, %v33_v4   ;;  %v136_v10 = vld [vmem:[%s491_s4] sm:$0xff]  ;;  %v139_v13 = vld [vmem:[%s491_s4 + $0x18] sm:$0xff]  ;;  %v235_v14 = vld [vmem:[%s492_s6 + $0x8] sm:$0xff] }
   0x5   :  { %350 = vmatpush3.bf16.xpose.msra.mxu0 %v75_v6  ;;  %v234_v15 = vld [vmem:[%s492_s6] sm:$0xff]  ;;  %v380_v35 = vld [vmem:[%s493_s3 + $0x8] sm:$0xff]  }
   0x6   :  { %54 = vperm.xlu1 %376, %v36_v8   ;;  %v379_v16 = vld [vmem:[%s493_s3] sm:$0xff]   ;;  %363 = vmatprep.subr.bf16.mxu0 %v385_v36 }
   0x7   :  { %359 = vmatprep.mubr.msk.bf16.mxu1 %vm170_vm1, %v379_v16  ;;  %v381_v55 = vld [vmem:[%s494_s5] sm:$0xff]  }
   0x8   :  { %44 = vperm.xlu0 %375, %v34_v7  }
   0xa   :  { %147 = vperm.xlu1 %376, %v137_v11  }
   0xc   :  { %352 = vmatmul.mubr.msk.bf16.vlgmr.msra.gmra.mrb[0].mxu0 %vm67_vm0, %v378_v9  ;;  %142 = vperm.xlu0 %375, %v136_v10  }
   0xd   :  { %367 = vmatprep.mubr.msk.bf16.mxu0 %vm386_vm2, %v385_v36 }
   0xe   :  { %157 = vperm.xlu1 %376, %v139_v13  }
  0x10   :  { %152 = vperm.xlu0 %375, %v138_v12  }
  0x12   :  { %238 = vperm.xlu1 %376, %v234_v15  }
  0x14   :  { %243 = vperm.xlu0 %375, %v235_v14  }
  0x81   :  { %v50_v17 = vpop.permute.xlu1 %49 }
  0x83   :  { %v40_v18 = vpop.permute.xlu0 %39 }
  0x85   :  { %v55_v22 = vpop.permute.xlu1 %54 }
  0x87   :  { %v45_v25 = vpop.permute.xlu0 %44 }
  0x89   :  { %v148_v38 = vpop.permute.xlu1 %147 }
  0x8b   :  { %v143_v37 = vpop.permute.xlu0 %142 }
  0x8d   :  { %v158_v43 = vpop.permute.xlu1 %157 }
  0x8f   :  { %v153_v39 = vpop.permute.xlu0 %152 }
  0x91   :  { %v239_v56 = vpop.permute.xlu1 %238 }
  0x93   :  { %v244_v60 = vpop.permute.xlu0 %243 }
  0xdf   :  { %v353_v19 = vpop.f32.mrb[0].mxu0 }
  0xe0   :  { %v120_v20 = vadd.f32 %v353_v19, %v50_v17  ;;  %v111_v21 = vpop.f32.mrb[1].mxu0 }
  0xe1   :  { %v112_v23 = vadd.f32 %v111_v21, %v40_v18  ;;  %v354_v24 = vpop.f32.mrb[2].mxu0 }
  0xe2   :  { %v123_v26 = vadd.f32 %v354_v24, %v55_v22  ;;  %v114_v27 = vpop.f32.mrb[3].mxu0  ;;  %v128_v29 = vmax.f32 %v120_v20, 0.0 }
  0xe3   :  { %v115_v28 = vadd.f32 %v114_v27, %v45_v25  ;;  %v126_v31 = vmax.f32 %v112_v23, 0.0 }
  0xe4   :  { %v129_v30 = vmax.f32 %v123_v26, 0.0 }
  0xe5   :  { %v127_v32 = vmax.f32 %v115_v28, 0.0 }
  0xe6   :  { %v135_v33 = vpack.c.bf16 %v129_v30, %v128_v29 }
  0xe7   :  { %v134_v34 = vpack.c.bf16 %v127_v32, %v126_v31 }
  0xe9   :  { %355 = vmatprep.subr.bf16.mxu1 %v134_v34 }
  0xea   :  { %356 = vmatpush3.bf16.msra.mxu1 %v134_v34 }
  0xeb   :  { %357 = vmatprep.subr.bf16.mxu1 %v135_v33 }
  0xee   :  { %358 = vmatpush3.bf16.msra.mxu1 %v135_v33 }
  0xf1   :  { %360 = vmatmul.mubr.msk.bf16.vlgmr.msra.gmra.mrb[0].mxu1 %vm170_vm1, %v380_v35 }
 0x1c4   :  { %v361_v40 = vpop.f32.mrb[0].mxu1 }
 0x1c5   :  { %v220_v41 = vadd.f32 %v361_v40, %v153_v39  ;;  %v211_v42 = vpop.f32.mrb[1].mxu1 }
 0x1c6   :  { %v212_v44 = vadd.f32 %v211_v42, %v143_v37  ;;  %v362_v45 = vpop.f32.mrb[2].mxu1 }
 0x1c7   :  { %v223_v46 = vadd.f32 %v362_v45, %v158_v43  ;;  %v214_v47 = vpop.f32.mrb[3].mxu1  ;;  %v228_v49 = vmax.f32 %v220_v41, 0.0 }
 0x1c8   :  { %v215_v48 = vadd.f32 %v214_v47, %v148_v38  ;;  %v226_v51 = vmax.f32 %v212_v44, 0.0 }
 0x1c9   :  { %v229_v50 = vmax.f32 %v223_v46, 0.0 }
 0x1ca   :  { %v227_v52 = vmax.f32 %v215_v48, 0.0 }
 0x1cb   :  { %v233_v53 = vpack.c.bf16 %v229_v50, %v228_v49 }
 0x1cc   :  { %v232_v54 = vpack.c.bf16 %v227_v52, %v226_v51 }
 0x1ce   :  { %364 = vmatpush3.bf16.msra.mxu0 %v232_v54 }
 0x1cf   :  { %365 = vmatprep.subr.bf16.mxu0 %v385_v36 }
 0x1d2   :  { %366 = vmatpush3.bf16.msra.mxu0 %v233_v53 }
 0x1d5   :  { %368 = vmatmul.mubr.msk.bf16.vlgmr.msra.gmra.mrb[4].mxu0 %vm170_vm1, %v381_v55 }
 0x2a8   :  { %v288_v57 = vpop.f32.mrb[4].mxu0 }
 0x2a9   :  { %v289_v58 = vadd.f32 %v288_v57, %v239_v56  ;;  %v369_v59 = vpop.f32.mrb[5].mxu0 }
 0x2aa   :  { %v291_v61 = vpop.f32.mrb[6].mxu0 }
 0x2ab   :  { %v337_v62 = vpack.c.bf16 %v289_v58, %v289_v58  ;;  %v292_v63 = vadd.f32 %v291_v61, %v244_v60  ;;  %v370_v0 = vpop.f32.mrb[7].mxu0 }
 0x2ad   :  { %319 = vst.msk [vmem:[%s495_s7] sm:$0xf] %vm318_vm3, %v337_v62  ;;  %v299_v1 = vmax.f32 %v292_v63, -20.0 }
 0x2af   :  { %v301_v2 = vmin.f32 %v299_v1, 2.0 }
 0x2b1   :  { %v304_v3 = vmul.f32 1.442695, %v301_v2 }
 0x2b3   :  { %382 = vpow2.f32 %v304_v3 }
 0x2bd   :  { %v383_v4 = vpop.eup %382 }
 0x2be   :  { %v338_v5 = vpack.c.bf16 %v383_v4, %v383_v4 }
 0x2c0   :  { %320 = vst.msk [vmem:[%s495_s7 + $0x4] sm:$0xf] %vm318_vm3, %v338_v5 }

</bundles_post_ra>
